<compile_context>
chip_gen: v7x
topology: tpu7x:2x2x1
jax: 0.10.0
libtpu: 0.0.40
codegen_flags: <defaults>
</compile_context>

<pallas_src>
import numpy as np
import jax
import jax.numpy as jnp
from jax.experimental import pallas as pl
from jax.experimental.pallas import tpu as pltpu

NEG_SLOPE = 0.2
PAD = 128              # lane padding for hidden (VMEM-only) layer widths
NUM_LAYERS = 3         # depth=4 => 2x (conv+ActNorm+LeakyReLU) + final conv
SUBLANE = 16           # batch-tile granularity (safe for bf16 activations)
DEFAULT_TILE_N = 4096  # batch tile; amortizes per-grid-step pipeline overhead
MIN_GRID_STEPS = 2     # keep >=2 steps at large N so v7x's 2 TCs both get work


def _round_up(x, m):
    return ((x + m - 1) // m) * m


def dense_embedder_kernel(x_ref, w0_ref, b0_ref, w1_ref, b1_ref, w2_ref, b2_ref,
                          o_ref):
    """One batch tile of the DenseEmbedder forward (ActNorm pre-folded).

    x_ref  : (TILE_N, in_dim)  bf16 activations (true width, no lane padding)
    w0_ref : (in_dim, 128)     bf16 folded weights (C_in, C_out layout)
    b0_ref : (1, 128)          f32  folded bias
    w1_ref : (128, 128)        bf16
    b1_ref : (1, 128)          f32
    w2_ref : (128, up_dim)     bf16 (true output width)
    b2_ref : (1, up_dim)       f32
    o_ref  : (TILE_N, up_dim)  f32 output (true width -> minimal HBM writeback)
    """
    # Block 0: conv (+ folded ActNorm) + LeakyReLU.  bf16 x bf16 -> f32 accum.
    h = jnp.dot(x_ref[...], w0_ref[...],
                preferred_element_type=jnp.float32) + b0_ref[...]
    h = jnp.maximum(h, NEG_SLOPE * h)

    # Block 1: conv (+ folded ActNorm) + LeakyReLU.
    h = jnp.dot(h.astype(jnp.bfloat16), w1_ref[...],
                preferred_element_type=jnp.float32) + b1_ref[...]
    h = jnp.maximum(h, NEG_SLOPE * h)

    # Final conv (no activation).
    h = jnp.dot(h.astype(jnp.bfloat16), w2_ref[...],
                preferred_element_type=jnp.float32) + b2_ref[...]

    o_ref[...] = h.astype(o_ref.dtype)


def init_dense_embedder_params(key, in_dim, up_dim, depth=4, dtype=jnp.float32):
    """Deterministic synthetic parameters matching DenseEmbedder.__init__ shapes."""
    dims = np.linspace(in_dim, up_dim, depth).astype(int)  # e.g. [4, 13, 22, 32]
    params = []
    keys = jax.random.split(key, 3 * (len(dims) - 1))
    ki = 0
    for l in range(len(dims) - 2):
        c_in, c_out = int(dims[l]), int(dims[l + 1])
        w = 0.1 * jax.random.normal(keys[ki], (c_out, c_in, 1, 1), dtype); ki += 1
        b = 0.1 * jax.random.normal(keys[ki], (c_out,), dtype); ki += 1
        # ActNorm inference params (data-dependent init not modeled).
        loc = 0.05 * jax.random.normal(keys[ki], (1, c_out, 1, 1), dtype); ki += 1
        scale = jnp.ones((1, c_out, 1, 1), dtype) + 0.05 * jax.random.normal(
            jax.random.fold_in(key, 1000 + l), (1, c_out, 1, 1), dtype)
        params.append(dict(w=w, b=b, loc=loc, scale=scale))
    c_in, c_out = int(dims[-2]), int(dims[-1])
    w = 0.1 * jax.random.normal(keys[ki], (c_out, c_in, 1, 1), dtype); ki += 1
    b = 0.1 * jax.random.normal(keys[ki], (c_out,), dtype); ki += 1
    params.append(dict(w=w, b=b))
    return dims, params


def pack_dense_embedder_params(params, hid_pad=PAD):
    """Fold ActNorm into conv weights/biases and pack per-layer arrays.

    Done ONCE (not per forward call). Weights are transposed to (C_in, C_out),
    hidden widths zero-padded to `hid_pad` lanes (VMEM-only, exact: zero lanes
    hit zero weight rows), stored in bf16 for the MXU.  Biases stay f32.
    Returns (w0, b0, w1, b1, w2, b2).
    """
    assert len(params) == NUM_LAYERS, (
        "This kernel is generated for depth=4 (2 ActNorm blocks + final conv).")

    def folded(p):
        w4 = np.asarray(p["w"], np.float32)            # (C_out, C_in, 1, 1)
        c_out, c_in = w4.shape[0], w4.shape[1]
        w = w4.reshape(c_out, c_in).T                  # (C_in, C_out)
        b = np.asarray(p["b"], np.float32).reshape(c_out)
        if "loc" in p:                                 # fold ActNorm (exact)
            loc = np.asarray(p["loc"], np.float32).reshape(c_out)
            sc = np.asarray(p["scale"], np.float32).reshape(c_out)
            w = w * sc[None, :]
            b = sc * (b + loc)
        return w, b, c_in, c_out

    w0_, b0_, in_dim, d1 = folded(params[0])
    w1_, b1_, d1b, d2 = folded(params[1])
    w2_, b2_, d2b, up_dim = folded(params[2])
    assert d1 == d1b and d2 == d2b
    assert max(d1, d2) <= hid_pad, "hidden width exceeds lane padding"

    w0 = np.zeros((in_dim, hid_pad), np.float32); w0[:, :d1] = w0_
    b0 = np.zeros((1, hid_pad), np.float32);      b0[0, :d1] = b0_
    w1 = np.zeros((hid_pad, hid_pad), np.float32); w1[:d1, :d2] = w1_
    b1 = np.zeros((1, hid_pad), np.float32);       b1[0, :d2] = b1_
    w2 = np.zeros((hid_pad, up_dim), np.float32);  w2[:d2, :] = w2_
    b2 = b2_.reshape(1, up_dim)

    return (jnp.asarray(w0, jnp.bfloat16), jnp.asarray(b0, jnp.float32),
            jnp.asarray(w1, jnp.bfloat16), jnp.asarray(b1, jnp.float32),
            jnp.asarray(w2, jnp.bfloat16), jnp.asarray(b2, jnp.float32))


def dense_embedder_forward(x_nchw, packed, up_dim, *, tile_n=DEFAULT_TILE_N):
    """Pallas-backed forward. x_nchw: (N, in_dim, 1, 1) f32 -> (N, up_dim) f32."""
    w0, b0, w1, b1, w2, b2 = packed
    N, C, H, W = x_nchw.shape
    assert H == 1 and W == 1, "DenseEmbedder expects (N, C, 1, 1) inputs"
    # bf16 activations halve input DMA; accumulation stays f32 in the kernel.
    x2d = x_nchw.reshape(N, C).astype(jnp.bfloat16)

    # Batch tile: multiple of SUBLANE, big enough to amortize per-step overhead,
    # capped so large N still yields >= MIN_GRID_STEPS steps (v7x: 2 TCs).
    step_cap = _round_up(max(1, -(-N // MIN_GRID_STEPS)), SUBLANE)
    tile_n = max(SUBLANE, min(tile_n, step_cap))
    n_pad = _round_up(N, tile_n)
    if n_pad != N:
        x2d = jnp.pad(x2d, ((0, n_pad - N), (0, 0)))  # rows only; lanes stay true

    grid = (n_pad // tile_n,)
    out = pl.pallas_call(
        dense_embedder_kernel,
        out_shape=jax.ShapeDtypeStruct((n_pad, up_dim), jnp.float32),
        grid=grid,
        in_specs=[
            # Activations: tiled over the batch, true (unpadded) channel width.
            pl.BlockSpec((tile_n, C), lambda i: (i, 0)),
            # Parameters: constant index_map -> fetched once, VMEM-resident.
            pl.BlockSpec(w0.shape, lambda i: (0, 0)),
            pl.BlockSpec(b0.shape, lambda i: (0, 0)),
            pl.BlockSpec(w1.shape, lambda i: (0, 0)),
            pl.BlockSpec(b1.shape, lambda i: (0, 0)),
            pl.BlockSpec(w2.shape, lambda i: (0, 0)),
            pl.BlockSpec(b2.shape, lambda i: (0, 0)),
        ],
        out_specs=pl.BlockSpec((tile_n, up_dim), lambda i: (i, 0)),
        compiler_params=pltpu.CompilerParams(
            dimension_semantics=("parallel",)),  # batch axis -> 2 TCs on v7x
    )(x2d, w0, b0, w1, b1, w2, b2)

    # Only row padding (if any) to remove; output already has true width.
    return out if n_pad == N else out[:N]


def dense_embedder_reference(x_nchw, params):
    """Pure-JAX f32 reference mirroring the PyTorch module semantics (unfolded)."""
    N, C, _, _ = x_nchw.shape
    h = x_nchw.reshape(N, C).astype(jnp.float32)
    for p in params:
        w4 = p["w"]
        c_out, c_in = w4.shape[0], w4.shape[1]
        h = h @ w4.reshape(c_out, c_in).T + p["b"].reshape(1, c_out)
        if "loc" in p:
            h = p["scale"].reshape(1, c_out) * (h + p["loc"].reshape(1, c_out))
            h = jnp.where(h >= 0.0, h, NEG_SLOPE * h)
    return h


if __name__ == "__main__":
    key = jax.random.PRNGKey(0)
    k_x, k_p = jax.random.split(key)

    in_dim, up_dim, depth = 4, 32, 4
    batch = 8

    dims, params = init_dense_embedder_params(k_p, in_dim, up_dim, depth)
    # Parameter prep (ActNorm fold + transpose + pad + bf16 cast) happens once.
    packed = pack_dense_embedder_params(params)

    # Input matching the PyTorch module convention: NCHW with H = W = 1.
    x = jax.random.normal(k_x, (batch, in_dim, 1, 1), jnp.float32)

    out = jax.block_until_ready(dense_embedder_forward(x, packed, up_dim))
    ref = jax.block_until_ready(dense_embedder_reference(x, params))

    assert out.shape == (batch, up_dim), out.shape
    # bf16 matmul operands vs. f32 reference -> loosened tolerance.
    np.testing.assert_allclose(np.asarray(out), np.asarray(ref),
                               rtol=3e-2, atol=3e-2)

    print("KERNEL_OK")
</pallas_src>

<mosaic_0001>
module attributes {stable_mosaic.version = 11 : i64} {
  func.func @dense_embedder_kernel(%arg0: i32, %arg1: memref<16x4xbf16, #tpu.memory_space<vmem>>, %arg2: memref<4x128xbf16, #tpu.memory_space<vmem>>, %arg3: memref<1x128xf32, #tpu.memory_space<vmem>>, %arg4: memref<128x128xbf16, #tpu.memory_space<vmem>>, %arg5: memref<1x128xf32, #tpu.memory_space<vmem>>, %arg6: memref<128x32xbf16, #tpu.memory_space<vmem>>, %arg7: memref<1x32xf32, #tpu.memory_space<vmem>>, %arg8: memref<16x32xf32, #tpu.memory_space<vmem>>) attributes {dimension_semantics = [#tpu.dimension_semantics<parallel>], iteration_bounds = array<i64: 1>, scalar_prefetch = 0 : i64, scratch_operands = 0 : i64, tpu.core_type = #tpu.core_type<tc>, window_params = [{transform_indices = @transform_0, window_bounds = array<i64: 16, 4>}, {pipeline_mode = #tpu.pipeline_mode<synchronous>, transform_indices = @transform_1, window_bounds = array<i64: 4, 128>}, {pipeline_mode = #tpu.pipeline_mode<synchronous>, transform_indices = @transform_2, window_bounds = array<i64: 1, 128>}, {pipeline_mode = #tpu.pipeline_mode<synchronous>, transform_indices = @transform_3, window_bounds = array<i64: 128, 128>}, {pipeline_mode = #tpu.pipeline_mode<synchronous>, transform_indices = @transform_4, window_bounds = array<i64: 1, 128>}, {pipeline_mode = #tpu.pipeline_mode<synchronous>, transform_indices = @transform_5, window_bounds = array<i64: 128, 32>}, {pipeline_mode = #tpu.pipeline_mode<synchronous>, transform_indices = @transform_6, window_bounds = array<i64: 1, 32>}, {transform_indices = @transform_7, window_bounds = array<i64: 16, 32>}]} {
    %c0 = arith.constant 0 : index
    %c0_0 = arith.constant 0 : index
    %0 = vector.load %arg1[%c0, %c0_0] : memref<16x4xbf16, #tpu.memory_space<vmem>>, vector<16x4xbf16>
    %c0_1 = arith.constant 0 : index
    %c0_2 = arith.constant 0 : index
    %1 = vector.load %arg2[%c0_1, %c0_2] : memref<4x128xbf16, #tpu.memory_space<vmem>>, vector<4x128xbf16>
    %cst = arith.constant dense<0.000000e+00> : vector<16x128xf32>
    %2 = tpu.matmul %0, %1, %cst {dimension_numbers = #tpu.dot_dimension_numbers<[1], [0], [0], [1], [0, 0, 1, 1], [], []>} : vector<16x4xbf16>, vector<4x128xbf16>, vector<16x128xf32> -> vector<16x128xf32>
    %c0_3 = arith.constant 0 : index
    %c0_4 = arith.constant 0 : index
    %3 = vector.load %arg3[%c0_3, %c0_4] : memref<1x128xf32, #tpu.memory_space<vmem>>, vector<1x128xf32>
    %4 = vector.broadcast %3 : vector<1x128xf32> to vector<16x128xf32>
    %5 = arith.addf %2, %4 : vector<16x128xf32>
    %cst_5 = arith.constant 2.000000e-01 : f32
    %6 = vector.broadcast %cst_5 : f32 to vector<16x128xf32>
    %7 = arith.mulf %6, %5 : vector<16x128xf32>
    %8 = arith.maximumf %5, %7 : vector<16x128xf32>
    %9 = arith.truncf %8 : vector<16x128xf32> to vector<16x128xbf16>
    %c0_6 = arith.constant 0 : index
    %c0_7 = arith.constant 0 : index
    %10 = vector.load %arg4[%c0_6, %c0_7] : memref<128x128xbf16, #tpu.memory_space<vmem>>, vector<128x128xbf16>
    %cst_8 = arith.constant dense<0.000000e+00> : vector<16x128xf32>
    %11 = tpu.matmul %9, %10, %cst_8 {dimension_numbers = #tpu.dot_dimension_numbers<[1], [0], [0], [1], [0, 0, 1, 1], [], []>} : vector<16x128xbf16>, vector<128x128xbf16>, vector<16x128xf32> -> vector<16x128xf32>
    %c0_9 = arith.constant 0 : index
    %c0_10 = arith.constant 0 : index
    %12 = vector.load %arg5[%c0_9, %c0_10] : memref<1x128xf32, #tpu.memory_space<vmem>>, vector<1x128xf32>
    %13 = vector.broadcast %12 : vector<1x128xf32> to vector<16x128xf32>
    %14 = arith.addf %11, %13 : vector<16x128xf32>
    %cst_11 = arith.constant 2.000000e-01 : f32
    %15 = vector.broadcast %cst_11 : f32 to vector<16x128xf32>
    %16 = arith.mulf %15, %14 : vector<16x128xf32>
    %17 = arith.maximumf %14, %16 : vector<16x128xf32>
    %18 = arith.truncf %17 : vector<16x128xf32> to vector<16x128xbf16>
    %c0_12 = arith.constant 0 : index
    %c0_13 = arith.constant 0 : index
    %19 = vector.load %arg6[%c0_12, %c0_13] : memref<128x32xbf16, #tpu.memory_space<vmem>>, vector<128x32xbf16>
    %cst_14 = arith.constant dense<0.000000e+00> : vector<16x32xf32>
    %20 = tpu.matmul %18, %19, %cst_14 {dimension_numbers = #tpu.dot_dimension_numbers<[1], [0], [0], [1], [0, 0, 1, 1], [], []>} : vector<16x128xbf16>, vector<128x32xbf16>, vector<16x32xf32> -> vector<16x32xf32>
    %c0_15 = arith.constant 0 : index
    %c0_16 = arith.constant 0 : index
    %21 = vector.load %arg7[%c0_15, %c0_16] : memref<1x32xf32, #tpu.memory_space<vmem>>, vector<1x32xf32>
    %22 = vector.broadcast %21 : vector<1x32xf32> to vector<16x32xf32>
    %23 = arith.addf %20, %22 : vector<16x32xf32>
    %c0_17 = arith.constant 0 : index
    %c0_18 = arith.constant 0 : index
    %24 = vector.load %arg8[%c0_17, %c0_18] : memref<16x32xf32, #tpu.memory_space<vmem>>, vector<16x32xf32>
    tpu.vector_store %arg8[%c0_17, %c0_18], %23 {strides = array<i32>} : memref<16x32xf32, #tpu.memory_space<vmem>>, vector<16x32xf32>,
    return
  }
  func.func @transform_0(%arg0: i32) -> (i32, i32) {
    %c0_i32 = arith.constant 0 : i32
    %c0_i32_0 = arith.constant 0 : i32
    return %arg0, %c0_i32 : i32, i32
  }
  func.func @transform_1(%arg0: i32) -> (i32, i32) {
    %c0_i32 = arith.constant 0 : i32
    %c0_i32_0 = arith.constant 0 : i32
    %c0_i32_1 = arith.constant 0 : i32
    return %c0_i32, %c0_i32_0 : i32, i32
  }
  func.func @transform_2(%arg0: i32) -> (i32, i32) {
    %c0_i32 = arith.constant 0 : i32
    %c0_i32_0 = arith.constant 0 : i32
    %c0_i32_1 = arith.constant 0 : i32
    return %c0_i32, %c0_i32_0 : i32, i32
  }
  func.func @transform_3(%arg0: i32) -> (i32, i32) {
    %c0_i32 = arith.constant 0 : i32
    %c0_i32_0 = arith.constant 0 : i32
    %c0_i32_1 = arith.constant 0 : i32
    return %c0_i32, %c0_i32_0 : i32, i32
  }
  func.func @transform_4(%arg0: i32) -> (i32, i32) {
    %c0_i32 = arith.constant 0 : i32
    %c0_i32_0 = arith.constant 0 : i32
    %c0_i32_1 = arith.constant 0 : i32
    return %c0_i32, %c0_i32_0 : i32, i32
  }
  func.func @transform_5(%arg0: i32) -> (i32, i32) {
    %c0_i32 = arith.constant 0 : i32
    %c0_i32_0 = arith.constant 0 : i32
    %c0_i32_1 = arith.constant 0 : i32
    return %c0_i32, %c0_i32_0 : i32, i32
  }
  func.func @transform_6(%arg0: i32) -> (i32, i32) {
    %c0_i32 = arith.constant 0 : i32
    %c0_i32_0 = arith.constant 0 : i32
    %c0_i32_1 = arith.constant 0 : i32
    return %c0_i32, %c0_i32_0 : i32, i32
  }
  func.func @transform_7(%arg0: i32) -> (i32, i32) {
    %c0_i32 = arith.constant 0 : i32
    %c0_i32_0 = arith.constant 0 : i32
    return %arg0, %c0_i32 : i32, i32
  }
}

</mosaic_0001>

<bundles_post_ra>
// kernel: tpu_custom_call.1
= control target key start
LH: loop header
LB: loop body
LE: loop exit
PB: predicated region body
PF: predicated region fallthrough
CT: control target
= control target key end

     0   :  { %vm47_vm0 = vcmask 1041408   ;;  %v478_v1 = vmov 0.0   ;;  %vm479_vm1 = vmmov 0   ;;  %vm43_vm2 = vcmask 31744   ;;  %s618_s0 = inlined_call_operand.vmem [shape: bf16[16,4], index: 0, kind: input, shape index: {}]   ;;  %s619_s1 = inlined_call_operand.vmem [shape: bf16[4,128], index: 1, kind: input, shape index: {}]   ;;  %s620_s2 = inlined_call_operand.vmem [shape: f32[1,128], index: 2, kind: input, shape index: {}]   ;;  %s621_s3 = inlined_call_operand.vmem [shape: bf16[128,128], index: 3, kind: input, shape index: {}]   ;;  %s622_s4 = inlined_call_operand.vmem [shape: f32[1,128], index: 4, kind: input, shape index: {}]   ;;  %s623_s5 = inlined_call_operand.vmem [shape: bf16[128,32], index: 5, kind: input, shape index: {}]   ;;  %s624_s6 = inlined_call_operand.vmem [shape: f32[1,32], index: 6, kind: input, shape index: {}]   ;;  %s625_s7 = inlined_call_operand.hbm [shape: f32[16,32], index: 7, kind: output, shape index: {}]  }
   0x1   :  { %v30_v0 = vld [vmem:[%s619_s1] sm:$0x3]  ;;  %386 = vmatprep.subr.bf16.mxu0 %v478_v1  ;;  %388 = vmatprep.mubr.msk.bf16.mxu0 %vm479_vm1, %v478_v1  ;;  %v439_v5 = vld [vmem:[%s621_s3 + $0x8] sm:$0xff]   ;;  %v440_v6 = vld [vmem:[%s621_s3 + $0x10] sm:$0xff]  }
   0x2   :  { %v49_v2 = vsel %vm47_vm0, %v30_v0, 0  ;;  %v437_v3 = vld [vmem:[%s618_s0] sm:$0xff]   ;;  %392 = vmatprep.subr.bf16.mxu1 %v478_v1  ;;  %408 = vmatprep.mubr.msk.bf16.mxu1 %vm479_vm1, %v478_v1  ;;  %v441_v7 = vld [vmem:[%s621_s3 + $0x18] sm:$0xff]  }
   0x3   :  { %387 = vmatpush3.bf16.msra.mxu0 %v49_v2  ;;  %v438_v4 = vld [vmem:[%s621_s3] sm:$0xff]  }
   0x4   :  { %412 = vmatprep.subr.bf16.mxu0 %v478_v1  ;;  %393 = vmatpush3.bf16.msra.mxu1 %v438_v4 }
   0x5   :  { %394 = vmatprep.subr.bf16.mxu1 %v478_v1 }
   0x6   :  { %389 = vmatmul.mubr.msk.bf16.vlgmr.msra.gmra.mrb[0].mxu0 %vm43_vm2, %v437_v3 }
   0x7   :  { %428 = vmatprep.mubr.msk.bf16.mxu0 %vm479_vm1, %v478_v1 }
   0x8   :  { %395 = vmatpush3.bf16.msra.mxu1 %v439_v5 }
   0x9   :  { %396 = vmatprep.subr.bf16.mxu1 %v478_v1 }
   0xc   :  { %397 = vmatpush3.bf16.msra.mxu1 %v440_v6 }
   0xd   :  { %398 = vmatprep.subr.bf16.mxu1 %v478_v1 }
   0xe   :  { %12 = vsyncpa [#allocation3], 0  ;;  %v442_v8 = vld [vmem:[%s621_s3 + $0x20] sm:$0xff]   ;;  %v443_v9 = vld [vmem:[%s621_s3 + $0x28] sm:$0xff]   ;;  %vm326_vm3 = vcmask 261120  }
   0xf   :  { %v444_v10 = vld [vmem:[%s621_s3 + $0x30] sm:$0xff]   ;;  %v445_v11 = vld [vmem:[%s621_s3 + $0x38] sm:$0xff]   ;;  %v446_v12 = vld [vmem:[%s623_s5] sm:$0xff]  }
  0x10   :  { %399 = vmatpush3.bf16.msra.mxu1 %v441_v7  ;;  %413 = vmatpush3.bf16.msra.mxu0 %v446_v12  ;;  %v447_v13 = vld [vmem:[%s623_s5 + $0x8] sm:$0xff]   ;;  %v448_v14 = vld [vmem:[%s623_s5 + $0x10] sm:$0xff]   ;;  %v449_v15 = vld [vmem:[%s623_s5 + $0x18] sm:$0xff]  }
  0x11   :  { %400 = vmatprep.subr.bf16.mxu1 %v478_v1  ;;  %414 = vmatprep.subr.bf16.mxu0 %v478_v1  ;;  %v450_v16 = vld [vmem:[%s623_s5 + $0x20] sm:$0xff]   ;;  %v451_v29 = vld [vmem:[%s623_s5 + $0x28] sm:$0xff]   ;;  %v452_v30 = vld [vmem:[%s623_s5 + $0x30] sm:$0xff]  }
  0x12   :  { %v345_v17 = vld [vmem:[%s620_s2] ss:$0 sm:$0xff]  ;;  %v453_v31 = vld [vmem:[%s623_s5 + $0x38] sm:$0xff]   ;;  %s480_s5 = smov [#allocation2]  }
  0x13   :  { %v348_v32 = vld [vmem:[%s622_s4] ss:$0 sm:$0xff]  ;;  %s334_s14 = sshll.u32 %s480_s5, 4  ;;  %s335_s14 = int_to_ptr.vmem [resolvable:$true] %s334_s14 }
  0x14   :  { %401 = vmatpush3.bf16.msra.mxu1 %v442_v8  ;;  %415 = vmatpush3.bf16.msra.mxu0 %v447_v13  ;;  %v357_v44 = vld [vmem:[%s624_s6] ss:$0 sm:$0xff]  ;;  %s454_s4 = scalar_lea.vmem %s335_s14, 256  ;;  %p459_p1 = scmp.lt.s32.totalorder %s335_s14, %s335_s14 }
  0x15   :  { %402 = vmatprep.subr.bf16.mxu1 %v478_v1  ;;  %416 = vmatprep.subr.bf16.mxu0 %v478_v1  ;;  %p455_p0 = scmp.ne.s32.totalorder %s335_s14, %s454_s4  ;;  %p460_p2 = scmp.lt.s32.totalorder %s454_s4, %s454_s4 }
  0x17   :  { %p461_p3 = por %p460_p2, %p459_p1 }
  0x18   :  { %403 = vmatpush3.bf16.msra.mxu1 %v443_v9  ;;  %417 = vmatpush3.bf16.msra.mxu0 %v448_v14 }
  0x19   :  { %404 = vmatprep.subr.bf16.mxu1 %v478_v1  ;;  %418 = vmatprep.subr.bf16.mxu0 %v478_v1  ;;  %p462_p4 = pnand %p461_p3, %p455_p0 }
  0x1c   :  { %405 = vmatpush3.bf16.msra.mxu1 %v444_v10  ;;  %419 = vmatpush3.bf16.msra.mxu0 %v449_v15 }
  0x1d   :  { %406 = vmatprep.subr.bf16.mxu1 %v478_v1  ;;  %420 = vmatprep.subr.bf16.mxu0 %v478_v1 }
  0x20   :  { %407 = vmatpush3.bf16.msra.mxu1 %v445_v11  ;;  %421 = vmatpush3.bf16.msra.mxu0 %v450_v16 }
  0x21   :  { %422 = vmatprep.subr.bf16.mxu0 %v478_v1 }
  0x24   :  { %423 = vmatpush3.bf16.msra.mxu0 %v451_v29 }
  0x25   :  { %424 = vmatprep.subr.bf16.mxu0 %v478_v1 }
  0x28   :  { %425 = vmatpush3.bf16.msra.mxu0 %v452_v30 }
  0x29   :  { %426 = vmatprep.subr.bf16.mxu0 %v478_v1 }
  0x2c   :  { %427 = vmatpush3.bf16.msra.mxu0 %v453_v31 }
  0xd9   :  { %v85_v18 = vpop.f32.mrb[0].mxu0 }
  0xda   :  { %v86_v19 = vadd.f32 %v345_v17, %v85_v18  ;;  %v390_v20 = vpop.f32.mrb[1].mxu0 }
  0xdb   :  { %v88_v21 = vpop.f32.mrb[2].mxu0 }
  0xdc   :  { %v92_v22 = vmul.f32 0.2, %v86_v19  ;;  %v89_v23 = vadd.f32 %v345_v17, %v88_v21  ;;  %v391_v24 = vpop.f32.mrb[3].mxu0 }
  0xde   :  { %v93_v25 = vmul.f32 0.2, %v89_v23  ;;  %v94_v26 = vmax.f32 %v86_v19, %v92_v22 }
  0xe0   :  { %v95_v27 = vmax.f32 %v89_v23, %v93_v25 }
  0xe2   :  { %v96_v28 = vpack.c.bf16 %v95_v27, %v94_v26 }
  0xe4   :  { %409 = vmatmul.mubr.bf16.vlgmr.msra.gmra.mrb[0].mxu1 %v96_v28 }
 0x1b7   :  { %v202_v33 = vpop.f32.mrb[0].mxu1 }
 0x1b8   :  { %v203_v34 = vadd.f32 %v348_v32, %v202_v33  ;;  %v410_v35 = vpop.f32.mrb[1].mxu1 }
 0x1b9   :  { %v205_v36 = vpop.f32.mrb[2].mxu1 }
 0x1ba   :  { %v209_v37 = vmul.f32 0.2, %v203_v34  ;;  %v206_v38 = vadd.f32 %v348_v32, %v205_v36  ;;  %v411_v39 = vpop.f32.mrb[3].mxu1 }
 0x1bc   :  { %v210_v40 = vmul.f32 0.2, %v206_v38  ;;  %v211_v41 = vmax.f32 %v203_v34, %v209_v37 }
 0x1be   :  { %v212_v42 = vmax.f32 %v206_v38, %v210_v40 }
 0x1c0   :  { %v213_v43 = vpack.c.bf16 %v212_v42, %v211_v41 }
 0x1c2   :  { %429 = vmatmul.mubr.bf16.vlgmr.msra.gmra.mrb[4].mxu0 %v213_v43 }
 0x295   :  { %v319_v45 = vpop.f32.mrb[4].mxu0 }
 0x296   :  { %v320_v46 = vadd.f32 %v357_v44, %v319_v45  ;;  %v430_v47 = vpop.f32.mrb[5].mxu0 }
 0x297   :  { %v322_v48 = vpop.f32.mrb[6].mxu0 }
 0x298   :  { %327 = vst.msk [vmem:[#allocation2] sm:$0xff] %vm326_vm3, %v320_v46  ;;  %v323_v49 = vadd.f32 %v357_v44, %v322_v48  ;;  %v431_v50 = vpop.f32.mrb[7].mxu0 }
 0x29a   :  { %328 = vst.msk [vmem:[#allocation2 + $0x8] sm:$0xff] %vm326_vm3, %v323_v49 }
 0x29b   :  { %465 = shalt.err (!%p462_p4)
}
 0x29c   :  { %s466_s16 = scalar_lea.hbm %s625_s7, 256 }
 0x29d   :  { %p467_p5 = scmp.ne.s32.totalorder %s625_s7, %s466_s16  ;;  %p470_p6 = scmp.lt.u32.totalorder %s466_s16, %s625_s7 }
 0x29f   :  { %p472_p7 = pnand %p470_p6, %p467_p5 }
 0x2a1   :  { %475 = shalt.err (!%p472_p7)
}
 0x2a2   :  { %s481_s21 = smov 128   ;;  %s482_s22 = smov 8  }
 0x2a3   :  { %340 = dma.vmem_to_hbm [thread:$0]  %s335_s14, 256, %s625_s7, [#allocation3], %s481_s21, %s481_s21, %s482_s22  }
 0x2a4   :  { %476 = dma.done.wait [#allocation3], 256  }
 0x2a5   :  { %477 = vsyncadd [#allocation3], 4294967040 }
 0x2a6   :  { %344 = vsyncpa [#allocation3], 1 }

</bundles_post_ra>
